<compile_context>
chip_gen: v7x
topology: tpu7x:2x2x1
jax: 0.10.0
libtpu: 0.0.40
codegen_flags: <defaults>
</compile_context>

<pallas_src>
import functools

import jax
import jax.numpy as jnp
from jax import lax
from jax.experimental import pallas as pl
from jax.experimental.pallas import tpu as pltpu


def _round_up(x, m):
    return (x + m - 1) // m * m


# ----------------------------------------------------------------------------
# Fused kernel: one grid step == `bt` batch elements (whole images in VMEM).
# ----------------------------------------------------------------------------
def _denselayer_kernel(x_ref, w1_ref, b1_ref, w2s_ref, b2_ref, mask_ref,
                       o_ref, ys_ref, *,
                       H, W, bt, cout_p, apply_final_relu, matmul_dtype):
    """Refs:
       x_ref   : (bt, cin, H*W)      f32  input images (natural NCHW slice)
       w1_ref  : (cout_p, cin)       md   1x1 conv weight (rows zero-padded)
       b1_ref  : (cout_p, 1)         f32  1x1 conv bias
       w2s_ref : (cout_p, 9*cout_p)  md   3x3 weight, tap-stacked along K
       b2_ref  : (cout_p, 1)         f32  3x3 conv bias
       mask_ref: (9, 1, H*W)         f32  precomputed pad=1 boundary masks
       o_ref   : (bt, cout_p, H*W)   f32  output images
       ys_ref  : (9*cout_p, H*W)     md   VMEM scratch: stacked shifted taps
    """
    HW = H * W
    f32 = jnp.float32
    md = matmul_dtype

    # Hoist constant loads out of the per-image loop.
    w1 = w1_ref[...]
    b1 = b1_ref[...]
    w2s = w2s_ref[...]
    b2 = b2_ref[...]
    masks = mask_ref[...]

    for b in range(bt):                         # static unroll over packed images
        # ---- My_Bn + 1x1 conv + ReLU (compressLayer) -------------------------
        x = x_ref[b].astype(f32)                            # (cin, HW)
        x = x - jnp.mean(x, axis=-1, keepdims=True)         # spatial mean / channel
        y = jnp.dot(w1, x.astype(md), preferred_element_type=f32) + b1
        y = jnp.maximum(y, 0.0)

        # ---- My_Bn on y (padded channels are exactly zero, mean stays zero) --
        y = y - jnp.mean(y, axis=-1, keepdims=True)

        # ---- build the stacked 3x3 taps (9*cout_p, HW) in VMEM scratch -------
        t = 0
        for dy in (-1, 0, 1):
            for dx in (-1, 0, 1):
                d = dy * W + dx                              # flattened pixel shift
                if d == 0:
                    tap = y                                  # center tap: no roll/mask
                else:
                    # tap[c, p] = y[c, p + d] via XLU lane rotation; zeroed where
                    # (row+dy, col+dx) falls outside the image (padding=1).
                    tap = pltpu.roll(y, (-d) % HW, axis=1) * masks[t]
                ys_ref[t * cout_p:(t + 1) * cout_p, :] = tap.astype(md)
                t += 1

        # ---- 3x3 conv as ONE K = 9*cout_p matmul + bias (+ ReLU) -------------
        z = jnp.dot(w2s, ys_ref[...], preferred_element_type=f32) + b2
        if apply_final_relu:
            z = jnp.maximum(z, 0.0)
        o_ref[b] = z.astype(o_ref.dtype)


# ----------------------------------------------------------------------------
# Batch-packing / VMEM sizing heuristics.
# ----------------------------------------------------------------------------
def _pick_images_per_step(N, cin, cout_p, HW, md_bytes, max_unroll=8):
    """Largest bt dividing N that fits a conservative VMEM budget while keeping
    >= 2 grid steps whenever N >= 2 (so both v7x TensorCores stay busy)."""
    def est(bt):
        x_blk = bt * cin * HW * 4
        o_blk = bt * cout_p * HW * 4
        ys = 9 * cout_p * HW * md_bytes
        live = 8 * cout_p * HW * 4                      # y / tap / z temporaries
        consts = cout_p * (cin + 9 * cout_p + 2) * md_bytes + 9 * HW * 4
        return 2 * (x_blk + o_blk) + ys + live + consts  # 2x = double buffering
    budget = 40 * 1024 * 1024
    best = 1
    for bt in range(1, min(N, max_unroll) + 1):
        if N % bt:
            continue
        if N >= 2 and N // bt < 2:
            continue
        if est(bt) > budget:
            continue
        best = bt
    return best, est(best)


# ----------------------------------------------------------------------------
# Wrapper: NCHW in -> NCHW out, single pallas_call, natural layout kept.
# ----------------------------------------------------------------------------
def denselayer_forward(x_nchw, params, *, apply_final_relu=True,
                       matmul_dtype=jnp.bfloat16):
    """x_nchw: (N, cin, H, W) float32 -> (N, cout, H, W) float32."""
    W1, b1, W2, b2 = params["W1"], params["b1"], params["W2"], params["b2"]
    N, cin, H, Wd = x_nchw.shape
    cout = W1.shape[0]
    HW = H * Wd
    cout_p = _round_up(cout, 8)                  # 31 -> 32: sublane aligned
    pc = cout_p - cout
    md = jnp.dtype(matmul_dtype)

    # ---- weights: pad cout, stack the 3x3 taps along the contraction axis ----
    w1m = jnp.pad(W1[:, :, 0, 0].astype(jnp.float32), ((0, pc), (0, 0))).astype(md)
    b1c = jnp.pad(b1.astype(jnp.float32), (0, pc)).reshape(cout_p, 1)
    W2p = jnp.pad(W2.astype(jnp.float32), ((0, pc), (0, pc), (0, 0), (0, 0)))
    # w2s[o, t*cout_p + i] = W2[o, i, ky, kx] with t = ky*3 + kx
    w2s = jnp.transpose(W2p, (0, 2, 3, 1)).reshape(cout_p, 9 * cout_p).astype(md)
    b2c = jnp.pad(b2.astype(jnp.float32), (0, pc)).reshape(cout_p, 1)

    # ---- precomputed pad=1 boundary masks, one per tap (stay VMEM resident) --
    pix = jnp.arange(HW, dtype=jnp.int32)
    row, col = pix // Wd, pix % Wd
    masks = jnp.stack([
        ((row + dy >= 0) & (row + dy < H) & (col + dx >= 0) & (col + dx < Wd))
        for dy in (-1, 0, 1) for dx in (-1, 0, 1)
    ]).astype(jnp.float32).reshape(9, 1, HW)

    x_flat = x_nchw.reshape(N, cin, HW).astype(jnp.float32)   # no transpose

    bt, est_bytes = _pick_images_per_step(N, cin, cout_p, HW, md.itemsize)
    vmem_limit = int(min(max(int(est_bytes * 1.25), 16 * 1024 * 1024),
                         48 * 1024 * 1024))
    # TODO(synk): for very large H*W (e.g. >= 128x128 on v7x's 64 MiB VMEM),
    # tile the pixel axis with a 1-row halo instead of holding whole images.

    kernel = functools.partial(
        _denselayer_kernel, H=H, W=Wd, bt=bt, cout_p=cout_p,
        apply_final_relu=apply_final_relu, matmul_dtype=md)

    out = pl.pallas_call(
        kernel,
        out_shape=jax.ShapeDtypeStruct((N, cout_p, HW), jnp.float32),
        grid=(N // bt,),
        in_specs=[
            pl.BlockSpec((bt, cin, HW), lambda n: (n, 0, 0)),        # x (batch slab)
            pl.BlockSpec((cout_p, cin), lambda n: (0, 0)),           # W1
            pl.BlockSpec((cout_p, 1), lambda n: (0, 0)),             # b1
            pl.BlockSpec((cout_p, 9 * cout_p), lambda n: (0, 0)),    # W2 tap-stacked
            pl.BlockSpec((cout_p, 1), lambda n: (0, 0)),             # b2
            pl.BlockSpec((9, 1, HW), lambda n: (0, 0, 0)),           # boundary masks
        ],
        out_specs=pl.BlockSpec((bt, cout_p, HW), lambda n: (n, 0, 0)),
        scratch_shapes=[pltpu.VMEM((9 * cout_p, HW), md)],
        compiler_params=pltpu.CompilerParams(
            dimension_semantics=("parallel",),
            vmem_limit_bytes=vmem_limit),
    )(x_flat, w1m, b1c, w2s, b2c, masks)

    return out[:, :cout, :].reshape(N, cout, H, Wd)


# ----------------------------------------------------------------------------
# Pure-JAX reference (PyTorch semantics) for correctness checking.
# ----------------------------------------------------------------------------
def reference_forward(x, params):
    W1, b1, W2, b2 = params["W1"], params["b1"], params["W2"], params["b2"]
    hp = lax.Precision.HIGHEST
    xb = x - jnp.mean(x, axis=(2, 3), keepdims=True)                  # My_Bn
    y = lax.conv_general_dilated(
        xb, W1, window_strides=(1, 1), padding="VALID",
        dimension_numbers=("NCHW", "OIHW", "NCHW"), precision=hp)
    y = jax.nn.relu(y + b1[None, :, None, None])
    yb = y - jnp.mean(y, axis=(2, 3), keepdims=True)                  # My_Bn
    z = lax.conv_general_dilated(
        yb, W2, window_strides=(1, 1), padding=[(1, 1), (1, 1)],
        dimension_numbers=("NCHW", "OIHW", "NCHW"), precision=hp)
    z = jax.nn.relu(z + b2[None, :, None, None])
    return z


def init_params(key, cin, cout):
    k1, k2, k3, k4 = jax.random.split(key, 4)
    return {
        # Conv2d(cin, cout, kernel=1): weight (cout, cin, 1, 1), bias (cout,)
        "W1": 0.1 * jax.random.normal(k1, (cout, cin, 1, 1), jnp.float32),
        "b1": 0.1 * jax.random.normal(k2, (cout,), jnp.float32),
        # Conv2d(cout, cout, kernel=3, padding=1): weight (cout, cout, 3, 3)
        "W2": 0.1 * jax.random.normal(k3, (cout, cout, 3, 3), jnp.float32),
        "b2": 0.1 * jax.random.normal(k4, (cout,), jnp.float32),
    }


if __name__ == "__main__":
    key = jax.random.PRNGKey(0)
    kx, kp = jax.random.split(key)

    Nb, cin, H, W = 2, 8, 16, 16
    cout = 31  # module default
    x = jax.random.normal(kx, (Nb, cin, H, W), jnp.float32)
    params = init_params(kp, cin, cout)

    ref = jax.block_until_ready(reference_forward(x, params))

    # Tight structural check: f32 MXU operands.
    out_f32 = jax.block_until_ready(
        denselayer_forward(x, params, matmul_dtype=jnp.float32))
    assert out_f32.shape == (Nb, cout, H, W), out_f32.shape
    err_f32 = float(jnp.max(jnp.abs(out_f32 - ref)))
    assert jnp.allclose(out_f32, ref, atol=1e-3, rtol=1e-3), err_f32

    # Production path: bf16 MXU inputs, f32 accumulation / means (looser check).
    out_bf16 = jax.block_until_ready(
        denselayer_forward(x, params, matmul_dtype=jnp.bfloat16))
    err_bf16 = float(jnp.max(jnp.abs(out_bf16 - ref)))
    assert jnp.allclose(out_bf16, ref, atol=2.5e-2, rtol=2.5e-2), err_bf16

    print("KERNEL_OK")
</pallas_src>

<mosaic_0001>
module attributes {stable_mosaic.version = 11 : i64} {
  func.func @_denselayer_kernel(%arg0: i32, %arg1: memref<1x8x256xf32, #tpu.memory_space<vmem>>, %arg2: memref<32x8xf32, #tpu.memory_space<vmem>>, %arg3: memref<32x1xf32, #tpu.memory_space<vmem>>, %arg4: memref<32x288xf32, #tpu.memory_space<vmem>>, %arg5: memref<32x1xf32, #tpu.memory_space<vmem>>, %arg6: memref<9x1x256xf32, #tpu.memory_space<vmem>>, %arg7: memref<1x32x256xf32, #tpu.memory_space<vmem>>, %arg8: memref<288x256xf32, #tpu.memory_space<vmem>>) attributes {dimension_semantics = [#tpu.dimension_semantics<parallel>], iteration_bounds = array<i64: 2>, scalar_prefetch = 0 : i64, scratch_operands = 1 : i64, tpu.core_type = #tpu.core_type<tc>, window_params = [{transform_indices = @transform_0, window_bounds = array<i64: 1, 8, 256>}, {pipeline_mode = #tpu.pipeline_mode<synchronous>, transform_indices = @transform_1, window_bounds = array<i64: 32, 8>}, {pipeline_mode = #tpu.pipeline_mode<synchronous>, transform_indices = @transform_2, window_bounds = array<i64: 32, 1>}, {pipeline_mode = #tpu.pipeline_mode<synchronous>, transform_indices = @transform_3, window_bounds = array<i64: 32, 288>}, {pipeline_mode = #tpu.pipeline_mode<synchronous>, transform_indices = @transform_4, window_bounds = array<i64: 32, 1>}, {pipeline_mode = #tpu.pipeline_mode<synchronous>, transform_indices = @transform_5, window_bounds = array<i64: 9, 1, 256>}, {transform_indices = @transform_6, window_bounds = array<i64: 1, 32, 256>}]} {
    %c0 = arith.constant 0 : index
    %c0_0 = arith.constant 0 : index
    %0 = vector.load %arg2[%c0, %c0_0] : memref<32x8xf32, #tpu.memory_space<vmem>>, vector<32x8xf32>
    %c0_1 = arith.constant 0 : index
    %c0_2 = arith.constant 0 : index
    %1 = vector.load %arg3[%c0_1, %c0_2] : memref<32x1xf32, #tpu.memory_space<vmem>>, vector<32x1xf32>
    %c0_3 = arith.constant 0 : index
    %c0_4 = arith.constant 0 : index
    %2 = vector.load %arg4[%c0_3, %c0_4] : memref<32x288xf32, #tpu.memory_space<vmem>>, vector<32x288xf32>
    %c0_5 = arith.constant 0 : index
    %c0_6 = arith.constant 0 : index
    %3 = vector.load %arg5[%c0_5, %c0_6] : memref<32x1xf32, #tpu.memory_space<vmem>>, vector<32x1xf32>
    %c0_7 = arith.constant 0 : index
    %c0_8 = arith.constant 0 : index
    %c0_9 = arith.constant 0 : index
    %4 = vector.load %arg6[%c0_7, %c0_8, %c0_9] : memref<9x1x256xf32, #tpu.memory_space<vmem>>, vector<9x1x256xf32>
    %c0_10 = arith.constant 0 : index
    %c0_11 = arith.constant 0 : index
    %c0_12 = arith.constant 0 : index
    %5 = vector.load %arg1[%c0_10, %c0_11, %c0_12] : memref<1x8x256xf32, #tpu.memory_space<vmem>>, vector<1x8x256xf32>
    %6 = vector.shape_cast %5 : vector<1x8x256xf32> to vector<8x256xf32>
    %cst = arith.constant dense<0.000000e+00> : vector<8xf32>
    %7 = vector.multi_reduction <add>, %6, %cst [1] : vector<8x256xf32> to vector<8xf32>
    %8 = vector.shape_cast %7 : vector<8xf32> to vector<8x1xf32>
    %cst_13 = arith.constant 2.560000e+02 : f32
    %9 = vector.broadcast %cst_13 : f32 to vector<8x1xf32>
    %10 = arith.divf %8, %9 : vector<8x1xf32>
    %11 = vector.broadcast %10 : vector<8x1xf32> to vector<8x256xf32>
    %12 = arith.subf %6, %11 : vector<8x256xf32>
    %cst_14 = arith.constant dense<0.000000e+00> : vector<32x256xf32>
    %13 = tpu.matmul %0, %12, %cst_14 {dimension_numbers = #tpu.dot_dimension_numbers<[1], [0], [0], [1], [0, 0, 1, 1], [], []>} : vector<32x8xf32>, vector<8x256xf32>, vector<32x256xf32> -> vector<32x256xf32>
    %14 = vector.broadcast %1 : vector<32x1xf32> to vector<32x256xf32>
    %15 = arith.addf %13, %14 : vector<32x256xf32>
    %cst_15 = arith.constant 0.000000e+00 : f32
    %16 = vector.broadcast %cst_15 : f32 to vector<32x256xf32>
    %17 = arith.maximumf %15, %16 : vector<32x256xf32>
    %cst_16 = arith.constant dense<0.000000e+00> : vector<32xf32>
    %18 = vector.multi_reduction <add>, %17, %cst_16 [1] : vector<32x256xf32> to vector<32xf32>
    %19 = vector.shape_cast %18 : vector<32xf32> to vector<32x1xf32>
    %cst_17 = arith.constant 2.560000e+02 : f32
    %20 = vector.broadcast %cst_17 : f32 to vector<32x1xf32>
    %21 = arith.divf %19, %20 : vector<32x1xf32>
    %22 = vector.broadcast %21 : vector<32x1xf32> to vector<32x256xf32>
    %23 = arith.subf %17, %22 : vector<32x256xf32>
    %c17_i32 = arith.constant 17 : i32
    %24 = tpu.dynamic_rotate %23 by %c17_i32 dim 1 : vector<32x256xf32>, i32 -> vector<32x256xf32>
    %25 = vector.extract_strided_slice %4 {offsets = [0, 0, 0], sizes = [1, 1, 256], strides = [1, 1, 1]} : vector<9x1x256xf32> to vector<1x1x256xf32>
    %26 = vector.shape_cast %25 : vector<1x1x256xf32> to vector<1x256xf32>
    %27 = vector.broadcast %26 : vector<1x256xf32> to vector<32x256xf32>
    %28 = arith.mulf %24, %27 : vector<32x256xf32>
    %c0_18 = arith.constant 0 : index
    %c0_19 = arith.constant 0 : index
    %29 = vector.load %arg8[%c0_18, %c0_19] : memref<288x256xf32, #tpu.memory_space<vmem>>, vector<32x256xf32>
    tpu.vector_store %arg8[%c0_18, %c0_19], %28 {strides = array<i32>} : memref<288x256xf32, #tpu.memory_space<vmem>>, vector<32x256xf32>,
    %c16_i32 = arith.constant 16 : i32
    %30 = tpu.dynamic_rotate %23 by %c16_i32 dim 1 : vector<32x256xf32>, i32 -> vector<32x256xf32>
    %31 = vector.extract_strided_slice %4 {offsets = [1, 0, 0], sizes = [1, 1, 256], strides = [1, 1, 1]} : vector<9x1x256xf32> to vector<1x1x256xf32>
    %32 = vector.shape_cast %31 : vector<1x1x256xf32> to vector<1x256xf32>
    %33 = vector.broadcast %32 : vector<1x256xf32> to vector<32x256xf32>
    %34 = arith.mulf %30, %33 : vector<32x256xf32>
    %c32 = arith.constant 32 : index
    %c0_20 = arith.constant 0 : index
    %35 = vector.load %arg8[%c32, %c0_20] : memref<288x256xf32, #tpu.memory_space<vmem>>, vector<32x256xf32>
    tpu.vector_store %arg8[%c32, %c0_20], %34 {strides = array<i32>} : memref<288x256xf32, #tpu.memory_space<vmem>>, vector<32x256xf32>,
    %c15_i32 = arith.constant 15 : i32
    %36 = tpu.dynamic_rotate %23 by %c15_i32 dim 1 : vector<32x256xf32>, i32 -> vector<32x256xf32>
    %37 = vector.extract_strided_slice %4 {offsets = [2, 0, 0], sizes = [1, 1, 256], strides = [1, 1, 1]} : vector<9x1x256xf32> to vector<1x1x256xf32>
    %38 = vector.shape_cast %37 : vector<1x1x256xf32> to vector<1x256xf32>
    %39 = vector.broadcast %38 : vector<1x256xf32> to vector<32x256xf32>
    %40 = arith.mulf %36, %39 : vector<32x256xf32>
    %c64 = arith.constant 64 : index
    %c0_21 = arith.constant 0 : index
    %41 = vector.load %arg8[%c64, %c0_21] : memref<288x256xf32, #tpu.memory_space<vmem>>, vector<32x256xf32>
    tpu.vector_store %arg8[%c64, %c0_21], %40 {strides = array<i32>} : memref<288x256xf32, #tpu.memory_space<vmem>>, vector<32x256xf32>,
    %c1_i32 = arith.constant 1 : i32
    %42 = tpu.dynamic_rotate %23 by %c1_i32 dim 1 : vector<32x256xf32>, i32 -> vector<32x256xf32>
    %43 = vector.extract_strided_slice %4 {offsets = [3, 0, 0], sizes = [1, 1, 256], strides = [1, 1, 1]} : vector<9x1x256xf32> to vector<1x1x256xf32>
    %44 = vector.shape_cast %43 : vector<1x1x256xf32> to vector<1x256xf32>
    %45 = vector.broadcast %44 : vector<1x256xf32> to vector<32x256xf32>
    %46 = arith.mulf %42, %45 : vector<32x256xf32>
    %c96 = arith.constant 96 : index
    %c0_22 = arith.constant 0 : index
    %47 = vector.load %arg8[%c96, %c0_22] : memref<288x256xf32, #tpu.memory_space<vmem>>, vector<32x256xf32>
    tpu.vector_store %arg8[%c96, %c0_22], %46 {strides = array<i32>} : memref<288x256xf32, #tpu.memory_space<vmem>>, vector<32x256xf32>,
    %c128 = arith.constant 128 : index
    %c0_23 = arith.constant 0 : index
    %48 = vector.load %arg8[%c128, %c0_23] : memref<288x256xf32, #tpu.memory_space<vmem>>, vector<32x256xf32>
    tpu.vector_store %arg8[%c128, %c0_23], %23 {strides = array<i32>} : memref<288x256xf32, #tpu.memory_space<vmem>>, vector<32x256xf32>,
    %c255_i32 = arith.constant 255 : i32
    %49 = tpu.dynamic_rotate %23 by %c255_i32 dim 1 : vector<32x256xf32>, i32 -> vector<32x256xf32>
    %50 = vector.extract_strided_slice %4 {offsets = [5, 0, 0], sizes = [1, 1, 256], strides = [1, 1, 1]} : vector<9x1x256xf32> to vector<1x1x256xf32>
    %51 = vector.shape_cast %50 : vector<1x1x256xf32> to vector<1x256xf32>
    %52 = vector.broadcast %51 : vector<1x256xf32> to vector<32x256xf32>
    %53 = arith.mulf %49, %52 : vector<32x256xf32>
    %c160 = arith.constant 160 : index
    %c0_24 = arith.constant 0 : index
    %54 = vector.load %arg8[%c160, %c0_24] : memref<288x256xf32, #tpu.memory_space<vmem>>, vector<32x256xf32>
    tpu.vector_store %arg8[%c160, %c0_24], %53 {strides = array<i32>} : memref<288x256xf32, #tpu.memory_space<vmem>>, vector<32x256xf32>,
    %c241_i32 = arith.constant 241 : i32
    %55 = tpu.dynamic_rotate %23 by %c241_i32 dim 1 : vector<32x256xf32>, i32 -> vector<32x256xf32>
    %56 = vector.extract_strided_slice %4 {offsets = [6, 0, 0], sizes = [1, 1, 256], strides = [1, 1, 1]} : vector<9x1x256xf32> to vector<1x1x256xf32>
    %57 = vector.shape_cast %56 : vector<1x1x256xf32> to vector<1x256xf32>
    %58 = vector.broadcast %57 : vector<1x256xf32> to vector<32x256xf32>
    %59 = arith.mulf %55, %58 : vector<32x256xf32>
    %c192 = arith.constant 192 : index
    %c0_25 = arith.constant 0 : index
    %60 = vector.load %arg8[%c192, %c0_25] : memref<288x256xf32, #tpu.memory_space<vmem>>, vector<32x256xf32>
    tpu.vector_store %arg8[%c192, %c0_25], %59 {strides = array<i32>} : memref<288x256xf32, #tpu.memory_space<vmem>>, vector<32x256xf32>,
    %c240_i32 = arith.constant 240 : i32
    %61 = tpu.dynamic_rotate %23 by %c240_i32 dim 1 : vector<32x256xf32>, i32 -> vector<32x256xf32>
    %62 = vector.extract_strided_slice %4 {offsets = [7, 0, 0], sizes = [1, 1, 256], strides = [1, 1, 1]} : vector<9x1x256xf32> to vector<1x1x256xf32>
    %63 = vector.shape_cast %62 : vector<1x1x256xf32> to vector<1x256xf32>
    %64 = vector.broadcast %63 : vector<1x256xf32> to vector<32x256xf32>
    %65 = arith.mulf %61, %64 : vector<32x256xf32>
    %c224 = arith.constant 224 : index
    %c0_26 = arith.constant 0 : index
    %66 = vector.load %arg8[%c224, %c0_26] : memref<288x256xf32, #tpu.memory_space<vmem>>, vector<32x256xf32>
    tpu.vector_store %arg8[%c224, %c0_26], %65 {strides = array<i32>} : memref<288x256xf32, #tpu.memory_space<vmem>>, vector<32x256xf32>,
    %c239_i32 = arith.constant 239 : i32
    %67 = tpu.dynamic_rotate %23 by %c239_i32 dim 1 : vector<32x256xf32>, i32 -> vector<32x256xf32>
    %68 = vector.extract_strided_slice %4 {offsets = [8, 0, 0], sizes = [1, 1, 256], strides = [1, 1, 1]} : vector<9x1x256xf32> to vector<1x1x256xf32>
    %69 = vector.shape_cast %68 : vector<1x1x256xf32> to vector<1x256xf32>
    %70 = vector.broadcast %69 : vector<1x256xf32> to vector<32x256xf32>
    %71 = arith.mulf %67, %70 : vector<32x256xf32>
    %c256 = arith.constant 256 : index
    %c0_27 = arith.constant 0 : index
    %72 = vector.load %arg8[%c256, %c0_27] : memref<288x256xf32, #tpu.memory_space<vmem>>, vector<32x256xf32>
    tpu.vector_store %arg8[%c256, %c0_27], %71 {strides = array<i32>} : memref<288x256xf32, #tpu.memory_space<vmem>>, vector<32x256xf32>,
    %c0_28 = arith.constant 0 : index
    %c0_29 = arith.constant 0 : index
    %73 = vector.load %arg8[%c0_28, %c0_29] : memref<288x256xf32, #tpu.memory_space<vmem>>, vector<288x256xf32>
    %cst_30 = arith.constant dense<0.000000e+00> : vector<32x256xf32>
    %74 = tpu.matmul %2, %73, %cst_30 {dimension_numbers = #tpu.dot_dimension_numbers<[1], [0], [0], [1], [0, 0, 1, 1], [], []>} : vector<32x288xf32>, vector<288x256xf32>, vector<32x256xf32> -> vector<32x256xf32>
    %75 = vector.broadcast %3 : vector<32x1xf32> to vector<32x256xf32>
    %76 = arith.addf %74, %75 : vector<32x256xf32>
    %cst_31 = arith.constant 0.000000e+00 : f32
    %77 = vector.broadcast %cst_31 : f32 to vector<32x256xf32>
    %78 = arith.maximumf %76, %77 : vector<32x256xf32>
    %c0_32 = arith.constant 0 : index
    %c0_33 = arith.constant 0 : index
    %c0_34 = arith.constant 0 : index
    %79 = vector.load %arg7[%c0_32, %c0_33, %c0_34] : memref<1x32x256xf32, #tpu.memory_space<vmem>>, vector<1x32x256xf32>
    %80 = vector.shape_cast %79 : vector<1x32x256xf32> to vector<32x256xf32>
    %81 = vector.shape_cast %78 : vector<32x256xf32> to vector<1x32x256xf32>
    tpu.vector_store %arg7[%c0_32, %c0_33, %c0_34], %81 {strides = array<i32>} : memref<1x32x256xf32, #tpu.memory_space<vmem>>, vector<1x32x256xf32>,
    return
  }
  func.func @transform_0(%arg0: i32) -> (i32, i32, i32) {
    %c0_i32 = arith.constant 0 : i32
    %c0_i32_0 = arith.constant 0 : i32
    %c0_i32_1 = arith.constant 0 : i32
    return %arg0, %c0_i32, %c0_i32_0 : i32, i32, i32
  }
  func.func @transform_1(%arg0: i32) -> (i32, i32) {
    %c0_i32 = arith.constant 0 : i32
    %c0_i32_0 = arith.constant 0 : i32
    %c0_i32_1 = arith.constant 0 : i32
    return %c0_i32, %c0_i32_0 : i32, i32
  }
  func.func @transform_2(%arg0: i32) -> (i32, i32) {
    %c0_i32 = arith.constant 0 : i32
    %c0_i32_0 = arith.constant 0 : i32
    %c0_i32_1 = arith.constant 0 : i32
    return %c0_i32, %c0_i32_0 : i32, i32
  }
  func.func @transform_3(%arg0: i32) -> (i32, i32) {
    %c0_i32 = arith.constant 0 : i32
    %c0_i32_0 = arith.constant 0 : i32
    %c0_i32_1 = arith.constant 0 : i32
    return %c0_i32, %c0_i32_0 : i32, i32
  }
  func.func @transform_4(%arg0: i32) -> (i32, i32) {
    %c0_i32 = arith.constant 0 : i32
    %c0_i32_0 = arith.constant 0 : i32
    %c0_i32_1 = arith.constant 0 : i32
    return %c0_i32, %c0_i32_0 : i32, i32
  }
  func.func @transform_5(%arg0: i32) -> (i32, i32, i32) {
    %c0_i32 = arith.constant 0 : i32
    %c0_i32_0 = arith.constant 0 : i32
    %c0_i32_1 = arith.constant 0 : i32
    %c0_i32_2 = arith.constant 0 : i32
    return %c0_i32, %c0_i32_0, %c0_i32_1 : i32, i32, i32
  }
  func.func @transform_6(%arg0: i32) -> (i32, i32, i32) {
    %c0_i32 = arith.constant 0 : i32
    %c0_i32_0 = arith.constant 0 : i32
    %c0_i32_1 = arith.constant 0 : i32
    return %arg0, %c0_i32, %c0_i32_0 : i32, i32, i32
  }
}

</mosaic_0001>

<bundles_post_ra>
// kernel: tpu_custom_call.1
= control target key start
LH: loop header
LB: loop body
LE: loop exit
PB: predicated region body
PF: predicated region fallthrough
CT: control target
= control target key end

     0   :  { %11 = vsyncpa [#allocation4], 0  ;;  %s2352_s0 = inlined_call_operand.hbm [shape: f32[2,8,256], index: 0, kind: input, shape index: {}]   ;;  %s2353_s1 = inlined_call_operand.vmem [shape: f32[32,8], index: 1, kind: input, shape index: {}]   ;;  %s2354_s2 = inlined_call_operand.vmem [shape: f32[32,1], index: 2, kind: input, shape index: {}]   ;;  %s2355_s3 = inlined_call_operand.vmem [shape: f32[32,288], index: 3, kind: input, shape index: {}]   ;;  %s2356_s4 = inlined_call_operand.vmem [shape: f32[32,1], index: 4, kind: input, shape index: {}]   ;;  %s2357_s5 = inlined_call_operand.vmem [shape: f32[9,1,256], index: 5, kind: input, shape index: {}]   ;;  %s2358_s6 = inlined_call_operand.hbm [shape: f32[2,32,256], index: 6, kind: output, shape index: {}]  }
   0x1   :  { %13 = vsyncpa [#allocation4 + $0x1], 0 }
   0x2   :  { %14 = vsyncpa [#allocation5], 0 }
   0x3   :  { %16 = vsyncpa [#allocation5 + $0x1], 0  ;;  %s1592_s21 = smov 0   ;;  %s1594_s22 = smov 0  }
   0x4   :  { %s1596_s23 = smov 0   ;;  %s1598_s24 = smov 0  }
   0x5 LB: > { %s1613_s25 = sadd.s32 4294967295, %s1542_s24   ;;  %s1275_s26 = sadd.s32 4294967294, %s1542_s24   ;;  %s1542_s24 = sphi %s1598_s24, %s2373_s24   ;;  %s1538_s23 = sphi %s1596_s23, %s2372_s23   ;;  %s1534_s22 = sphi %s1594_s22, %s2371_s22   ;;  %s1530_s21 = sphi %s1592_s21, %s2370_s21  }
   0x6   : > { %s1617_s27 = sadd.s32 1, %s1542_s24   ;;  %s29_s28 = sadd.s32 1, %s1538_s23 }
   0x7   : > { %s26_s29 = ssub.s32 %s1542_s24, %s1617_s27  ;;  %p36_p0 = scmp.ne.s32.totalorder %s1538_s23, %s1534_s22 }
   0x8   : > { %p27_p1 = scmp.eq.s32.totalorder %s26_s29, 0  ;;  %p37_p2 = scmp.eq.s32.totalorder %s1542_s24, 0 }
   0x9   : > { %p42_p3 = scmp.ne.s32.totalorder %s1534_s22, %s1530_s21  ;;  %p43_p4 = scmp.eq.s32.totalorder %s1613_s25, 0 }
   0xa   : > { %s1629_s30 = scalar_select %p27_p1, %s1538_s23, %s29_s28  }
   0xb   : > { %p1631_p5 = por %p37_p2, %p36_p0  ;;  %p1635_p6 = por %p43_p4, %p42_p3 }
   0xc   : > { %p171_p7 = scmp.eq.s32.totalorder %s1613_s25, 1  ;;  %p177_p8 = scmp.eq.s32.totalorder %s1275_s26, 1 }
   0xd   : > { %p1399_p10 = scmp.lt.s32.totalorder %s1542_s24, 2  ;;  %s212_s11 = sand.u32 1, %s1538_s23  }
   0xe   : > { %p1642_p11 = por %p171_p7, %p36_p0  ;;  %p1646_p12 = por %p177_p8, %p42_p3 }
   0xf   : > { %s1297_s12 = sshll.u32 %s1542_s24, 8  ;;  %s1278_s13 = sshll.u32 %s212_s11, 4 }
  0x10   : > { %s2362_s9 = scalar_select %p1642_p11, 1, 0 }
  0x11   : > { %s2363_s10 = scalar_select %p1646_p12, 1, 0 }
  0x12   : > { %s1655_s16 = scalar_lea.hbm %s2352_s0, %s1297_s12  ;;  %s216_s17 = scalar_lea.vmem [#allocation3], %s1278_s13 }
  0x13   : > { %s224_s18 = sshll.u32 %s216_s17, 4  ;;  %p1659_p13 = pnand %p1399_p10, %p1631_p5  ;;  %s1663_s18 = int_to_ptr.vmem [resolvable:$true] %s224_s18 }
  0x14   : > { %s213_s20 = scalar_lea.sflag [#allocation4], %s212_s11  ;;  %s1446_s26 = scalar_lea.hbm %s1655_s16, 256 }
  0x15   : > { %p1447_p2 = scmp.ne.s32.totalorder %s1655_s16, %s1446_s26  ;;  %p1448_p3 = pneg %p1659_p13 }
  0x16   : > { %s1451_s7 = scalar_lea.hbm %s2352_s0, 512  ;;  %p1452_p5 = scmp.lt.u32.totalorder %s1655_s16, %s2352_s0 }
  0x17   : > { %p1449_p4 = pnand %p1448_p3, %p1447_p2  ;;  %p1453_p8 = scmp.lt.u32.totalorder %s1451_s7, %s1446_s26 }
  0x18   : > { %p1455_p9 = scmp.lt.u32.totalorder %s1446_s26, %s1655_s16 }
  0x19   : > { %p1450_p7 = pneg %p1449_p4  ;;  %p1454_p10 = por %p1453_p8, %p1452_p5 }
  0x1b   : > { %p1456_p0 = por %p1455_p9, %p1454_p10 }
  0x1d   : > { %p1457_p1 = pnand %p1456_p0, %p1450_p7 }
  0x1f   : > { %1460 = shalt.err (!%p1457_p1)
}
  0x20   : > { %s1461_s11 = scalar_lea.vmem %s1663_s18, 256  ;;  %s1544_s14 = smov [#allocation3]  }
  0x21   : > { %p1462_p2 = scmp.ne.s32.totalorder %s1663_s18, %s1461_s11  ;;  %s1466_s15 = sshll.u32 %s1544_s14, 4  ;;  %s1467_s15 = int_to_ptr.vmem [resolvable:$false] %s1466_s15 }
  0x22   : > { %s1468_s17 = scalar_lea.vmem %s1467_s15, 512  ;;  %p1469_p11 = scmp.lt.s32.totalorder %s1663_s18, %s1467_s15 }
  0x23   : > { %p1464_p4 = pnand %p1462_p2, %p1448_p3  ;;  %p1470_p5 = scmp.lt.s32.totalorder %s1468_s17, %s1461_s11 }
  0x25   : > { %p1465_p12 = pneg %p1464_p4  ;;  %p1471_p8 = por %p1470_p5, %p1469_p11 }
  0x27   : > { %p1472_p9 = pnand %p1471_p8, %p1465_p12 }
  0x29   : > { %1475 = shalt.err (!%p1472_p9)
}
  0x2a   : > { %1394 = dma.hbm_to_vmem [thread:$0]  (!%p1659_p13), %s1655_s16, 256, %s1663_s18, %s213_s20  }
  0x2b   : > { %p2365_p0 = scmp.lt.s32.totalorder %s1542_s24, 3  ;;  %p2366_p1 = scmp.ge.s32.totalorder %s1542_s24, 1 }
  0x2d   : > { %p230_p3 = pnand %p2366_p1, %p2365_p0 }
  0x2e   : > { %s1697_s26 = sand.u32 (!%p230_p3), 1, %s1534_s22  }
  0x2f   : > { %233 = sbr.rel (%p230_p3) target bundleno = 1075 (0x433), region = 44  ;;  %s1282_s28 = sshll.u32 (!%p230_p3), %s1697_s26, 4 }
  0x30   : > { %s236_s29 = scalar_lea.sflag (!%p230_p3), [#allocation4], %s1697_s26  ;;  %s239_s7 = scalar_lea.vmem (!%p230_p3), [#allocation3], %s1282_s28 }
  0x36   : > { %1521 = dma.done.wait (%p1635_p6), %s236_s29, 256  }
  0x37   : > { %1523 = vsyncadd (%p1635_p6), %s236_s29, 4294967040  ;;  %v300_v0 = vld [vmem:[%s239_s7] sm:$0xff]  ;;  %v301_v1 = vld [vmem:[%s239_s7 + $0x8] sm:$0xff]  ;;  %v1545_v3 = vmov 0.0   ;;  %v1546_v6 = vmov 0   ;;  %vm329_vm0 = vcmask 64512  }
  0x38   : > { %v302_v2 = vadd.f32 %v301_v1, %v300_v0  ;;  %406 = vmatprep.mubr.f32.mxu0 %v1545_v3  ;;  %v272_v4 = vld [vmem:[%s2354_s2] sm:$0xff]  ;;  %v273_v5 = vld [vmem:[%s2354_s2 + $0x8] sm:$0xff]  ;;  %1444 = vset.pattern.permute.xlu0 %v1546_v6  ;;  %v274_v7 = vld [vmem:[%s2354_s2 + $0x10] sm:$0xff]  ;;  %s1547_s19 = smov 17   ;;  %s1548_s20 = smov 16   ;;  %vm981_vm9 = vcmask 261120  }
  0x39   : > { %1445 = vset.pattern.permute.xlu1 %v1546_v6  ;;  %v275_v8 = vld [vmem:[%s2354_s2 + $0x18] sm:$0xff]  ;;  %v268_v13 = vld [vmem:[%s2353_s1] sm:$0xff]  ;;  %v269_v14 = vld [vmem:[%s2353_s1 + $0x8] sm:$0xff]  ;;  %s1549_s8 = smov 15   ;;  %s1550_s12 = smov 1   ;;  %v479_v6 = vlaneseq }
  0x3a   : > { %303 = vadd.xlane.f32.xlu0 %v302_v2  ;;  %316 = vperm.xlu1 %1445, %v273_v5   ;;  %v270_v15 = vld [vmem:[%s2353_s1 + $0x10] sm:$0xff]  ;;  %v271_v16 = vld [vmem:[%s2353_s1 + $0x18] sm:$0xff]  ;;  %s1551_s13 = smov 127   ;;  %s1552_s11 = smov 113   ;;  %v289_v2 = vld [vmem:[%s2356_s4 + $0x8] sm:$0xff] }
  0x3b   : > { %s1553_s14 = smov 112   ;;  %s1554_s15 = smov 111  }
  0x3c   : > { %s1189_s7 = scalar_lea.sflag [#allocation5], %s1697_s26  ;;  %p2367_p11 = scmp.ne.s32.totalorder %s2362_s9, 0 }
  0x3e   : > { %321 = vperm.xlu1 %1445, %v274_v7   ;;  %v291_v7 = vld [vmem:[%s2356_s4 + $0x18] sm:$0xff] }
  0x42   : > { %326 = vperm.xlu1 %1445, %v275_v8   ;;  %v1876_v8 = vand.u32 127, %v479_v6 }
  0x44   : > { %vm533_vm1 = vcmp.lt.s32.totalorder %v1876_v8, 16  ;;  %vm585_vm2 = vcmp.lt.s32.totalorder %v1876_v8, 15  ;;  %vm637_vm3 = vcmp.lt.s32.totalorder %v1876_v8, 1  ;;  %vm481_vm4 = vcmp.lt.s32.totalorder %v1876_v8, 17 }
  0x45   : > { %vm697_vm5 = vcmp.lt.s32.totalorder %v1876_v8, 127  ;;  %vm749_vm6 = vcmp.lt.s32.totalorder %v1876_v8, 113  ;;  %vm853_vm7 = vcmp.lt.s32.totalorder %v1876_v8, 111  ;;  %vm801_vm8 = vcmp.lt.s32.totalorder %v1876_v8, 112  ;;  %v280_v8 = vld [vmem:[%s2355_s3 + $0x20] sm:$0xff] }
  0x50   : > { %311 = vperm.xlu0 %1444, %v272_v4  }
  0xb9   : > { %v317_v18 = vpop.permute.xlu1 %316 }
  0xbd   : > { %v322_v26 = vpop.permute.xlu1 %321 }
  0xc1   : > { %v327_v38 = vpop.permute.xlu1 %326 }
  0xc7   : > { %v304_v9 = vpop.xlane.xlu0 %303 }
  0xc8   : > { %v306_v10 = vmul.f32 0.00390625, %v304_v9 }
  0xca   : > { %v308_v11 = vsub.f32 %v301_v1, %v306_v10  ;;  %v307_v12 = vsub.f32 %v300_v0, %v306_v10 }
  0xcc   : > { %342 = vmatprep.subr.mxu0 %v308_v11 }
  0xcd   : > { %343 = vmatpush1.msra.mxu0 %v307_v12 }
  0xce   : > { %1284 = vmatmul.mubr.msk.f32.vlgmr.msra.gmra.mrb[0].mxu0 %vm329_vm0, %v268_v13  ;;  %v277_v13 = vld [vmem:[%s2355_s3 + $0x8] sm:$0xff] }
  0xcf   : > { %412 = vmatprep.mubr.f32.mxu0 %v1545_v3  ;;  %v312_v17 = vpop.permute.xlu0 %311  ;;  %1058 = vmatprep.mubr.f32.mxu1 %v277_v13 }
  0xd2   : > { %1285 = vmatmul.mubr.msk.f32.gmra.mrb[2].mxu0 %vm329_vm0, %v269_v14 }
  0xd3   : > { %418 = vmatprep.mubr.f32.mxu0 %v1545_v3 }
  0xd6   : > { %1286 = vmatmul.mubr.msk.f32.gmra.mrb[4].mxu0 %vm329_vm0, %v270_v15 }
  0xd7   : > { %424 = vmatprep.mubr.f32.mxu0 %v1545_v3 }
  0xda   : > { %1287 = vmatmul.mubr.msk.f32.gmra.mrb[6].mxu0 %vm329_vm0, %v271_v16 }
  0xdb   : > { %1147 = vmatprep.mubr.f32.mxu0 %v1545_v3 }
 0x1a1   : > { %v408_v19 = vpop.f32.mrb[0].mxu0 }
 0x1a2   : > { %v409_v20 = vadd.f32 %v408_v19, %v312_v17  ;;  %v410_v21 = vpop.f32.mrb[1].mxu0 }
 0x1a3   : > { %v411_v22 = vadd.f32 %v410_v21, %v312_v17 }
 0x1a4   : > { %v431_v23 = vmax.f32 %v409_v20, 0.0 }
 0x1a5   : > { %v432_v24 = vmax.f32 %v411_v22, 0.0  ;;  %v414_v25 = vpop.f32.mrb[2].mxu0  ;;  %v288_v22 = vld [vmem:[%s2356_s4] sm:$0xff] }
 0x1a6   : > { %v415_v27 = vadd.f32 %v414_v25, %v317_v18  ;;  %v416_v28 = vpop.f32.mrb[3].mxu0  ;;  %v492_v25 = vshrl.u32 %v479_v6, 7 }
 0x1a7   : > { %v417_v29 = vadd.f32 %v416_v28, %v317_v18  ;;  %v439_v30 = vadd.f32 %v432_v24, %v431_v23 }
 0x1a8   : > { %v433_v31 = vmax.f32 %v415_v27, 0.0 }
 0x1a9   : > { %v434_v32 = vmax.f32 %v417_v29, 0.0  ;;  %v420_v33 = vpop.f32.mrb[4].mxu0  ;;  %440 = vadd.xlane.f32.xlu1 %v439_v30 }
 0x1aa   : > { %v421_v34 = vadd.f32 %v420_v33, %v322_v26  ;;  %v422_v35 = vpop.f32.mrb[5].mxu0  ;;  %v292_v33 = vld [vmem:[%s2357_s5] sm:$0x3] }
 0x1ab   : > { %v423_v36 = vadd.f32 %v422_v35, %v322_v26  ;;  %v442_v37 = vadd.f32 %v434_v32, %v433_v31  ;;  %v290_v26 = vld [vmem:[%s2356_s4 + $0x10] sm:$0xff] }
 0x1ac   : > { %v435_v39 = vmax.f32 %v421_v34, 0.0 }
 0x1ad   : > { %v436_v40 = vmax.f32 %v423_v36, 0.0  ;;  %v426_v41 = vpop.f32.mrb[6].mxu0  ;;  %443 = vadd.xlane.f32.xlu0 %v442_v37 }
 0x1ae   : > { %v427_v42 = vadd.f32 %v426_v41, %v327_v38  ;;  %v428_v43 = vpop.f32.mrb[7].mxu0 }
 0x1af   : > { %v429_v44 = vadd.f32 %v428_v43, %v327_v38  ;;  %v445_v45 = vadd.f32 %v436_v40, %v435_v39 }
 0x1b0   : > { %v437_v46 = vmax.f32 %v427_v42, 0.0 }
 0x1b1   : > { %v438_v47 = vmax.f32 %v429_v44, 0.0  ;;  %446 = vadd.xlane.f32.xlu1 %v445_v45 }
 0x1b3   : > { %v448_v48 = vadd.f32 %v438_v47, %v437_v46 }
 0x1b5   : > { %449 = vadd.xlane.f32.xlu1 %v448_v48 }
 0x236   : > { %v441_v49 = vpop.xlane.xlu1 %440 }
 0x237   : > { %v451_v50 = vmul.f32 0.00390625, %v441_v49 }
 0x239   : > { %v1734_v51 = vsub.f32 %v431_v23, %v451_v50  ;;  %v1738_v54 = vsub.f32 %v432_v24, %v451_v50 }
 0x23a   : > { %v444_v52 = vpop.xlane.xlu0 %443 }
 0x23b   : > { %v452_v53 = vmul.f32 0.00390625, %v444_v52  ;;  %463 = vrot.lane.b32.xlu1 %v1734_v51, %s1547_s19 }
 0x23d   : > { %v1740_v55 = vsub.f32 %v434_v32, %v452_v53  ;;  %v1746_v56 = vsub.f32 %v433_v31, %v452_v53  ;;  %v1934_v31 = vsub.s32 0, %v492_v25  ;;  %v1936_v32 = vsub.s32 1, %v492_v25 }
 0x23e   : > { %v447_v57 = vpop.xlane.xlu1 %446 }
 0x23f   : > { %473 = vrot.lane.b32.xlu0 %v1740_v55, %s1547_s19  ;;  %471 = vrot.lane.b32.xlu1 %v1738_v54, %s1547_s19  ;;  %v453_v58 = vmul.f32 0.00390625, %v447_v57  ;;  %v494_v36 = vrot.slane %v292_v33, %v1934_v31  ;;  %v498_v37 = vrot.slane %v292_v33, %v1936_v32 }
 0x241   : > { %v1780_v59 = vsub.f32 %v435_v39, %v453_v58  ;;  %v1786_v60 = vsub.f32 %v436_v40, %v453_v58 }
 0x242   : > { %v450_v61 = vpop.xlane.xlu1 %449 }
 0x243   : > { %519 = vrot.lane.b32.xlu0 %v1746_v56, %s1548_s20  ;;  %517 = vrot.lane.b32.xlu1 %v1734_v51, %s1548_s20  ;;  %v454_v62 = vmul.f32 0.00390625, %v450_v61 }
 0x245   : > { %v1804_v63 = vsub.f32 %v437_v46, %v454_v62  ;;  %v1810_v0 = vsub.f32 %v438_v47, %v454_v62 }
 0x247   : > { %527 = vrot.lane.b32.xlu0 %v1740_v55, %s1548_s20  ;;  %525 = vrot.lane.b32.xlu1 %v1738_v54, %s1548_s20 }
 0x24b   : > { %571 = vrot.lane.b32.xlu0 %v1746_v56, %s1549_s8  ;;  %569 = vrot.lane.b32.xlu1 %v1734_v51, %s1549_s8 }
 0x24f   : > { %579 = vrot.lane.b32.xlu0 %v1740_v55, %s1549_s8  ;;  %577 = vrot.lane.b32.xlu1 %v1738_v54, %s1549_s8 }
 0x253   : > { %623 = vrot.lane.b32.xlu0 %v1746_v56, %s1550_s12  ;;  %621 = vrot.lane.b32.xlu1 %v1734_v51, %s1550_s12 }
 0x257   : > { %631 = vrot.lane.b32.xlu0 %v1740_v55, %s1550_s12  ;;  %629 = vrot.lane.b32.xlu1 %v1738_v54, %s1550_s12 }
 0x25b   : > { %683 = vrot.lane.b32.xlu0 %v1746_v56, %s1551_s13  ;;  %681 = vrot.lane.b32.xlu1 %v1734_v51, %s1551_s13 }
 0x25f   : > { %691 = vrot.lane.b32.xlu0 %v1740_v55, %s1551_s13  ;;  %465 = vrot.lane.b32.xlu1 %v1746_v56, %s1547_s19 }
 0x263   : > { %735 = vrot.lane.b32.xlu0 %v1746_v56, %s1552_s11  ;;  %467 = vrot.lane.b32.xlu1 %v1780_v59, %s1547_s19 }
 0x267   : > { %743 = vrot.lane.b32.xlu0 %v1740_v55, %s1552_s11  ;;  %475 = vrot.lane.b32.xlu1 %v1786_v60, %s1547_s19 }
 0x26b   : > { %787 = vrot.lane.b32.xlu0 %v1746_v56, %s1553_s14  ;;  %521 = vrot.lane.b32.xlu1 %v1780_v59, %s1548_s20 }
 0x26f   : > { %795 = vrot.lane.b32.xlu0 %v1740_v55, %s1553_s14  ;;  %529 = vrot.lane.b32.xlu1 %v1786_v60, %s1548_s20 }
 0x273   : > { %839 = vrot.lane.b32.xlu0 %v1746_v56, %s1554_s15  ;;  %573 = vrot.lane.b32.xlu1 %v1780_v59, %s1549_s8 }
 0x277   : > { %581 = vrot.lane.b32.xlu1 %v1786_v60, %s1549_s8  ;;  %523 = vrot.lane.b32.xlu0 %v1804_v63, %s1548_s20 }
 0x27b   : > { %625 = vrot.lane.b32.xlu1 %v1780_v59, %s1550_s12  ;;  %531 = vrot.lane.b32.xlu0 %v1810_v0, %s1548_s20 }
 0x27f   : > { %633 = vrot.lane.b32.xlu1 %v1786_v60, %s1550_s12  ;;  %575 = vrot.lane.b32.xlu0 %v1804_v63, %s1549_s8 }
 0x283   : > { %583 = vrot.lane.b32.xlu0 %v1810_v0, %s1549_s8  ;;  %469 = vrot.lane.b32.xlu1 %v1804_v63, %s1547_s19 }
 0x287   : > { %627 = vrot.lane.b32.xlu0 %v1804_v63, %s1550_s12  ;;  %477 = vrot.lane.b32.xlu1 %v1810_v0, %s1547_s19 }
 0x28b   : > { %635 = vrot.lane.b32.xlu0 %v1810_v0, %s1550_s12  ;;  %689 = vrot.lane.b32.xlu1 %v1738_v54, %s1551_s13 }
 0x28f   : > { %847 = vrot.lane.b32.xlu0 %v1740_v55, %s1554_s15  ;;  %685 = vrot.lane.b32.xlu1 %v1780_v59, %s1551_s13 }
 0x293   : > { %687 = vrot.lane.b32.xlu0 %v1804_v63, %s1551_s13  ;;  %693 = vrot.lane.b32.xlu1 %v1786_v60, %s1551_s13 }
 0x297   : > { %695 = vrot.lane.b32.xlu0 %v1810_v0, %s1551_s13  ;;  %733 = vrot.lane.b32.xlu1 %v1734_v51, %s1552_s11  ;;  %s1283_s13 = sshll.u32 %s1697_s26, 6 }
 0x29b   : > { %739 = vrot.lane.b32.xlu0 %v1804_v63, %s1552_s11  ;;  %741 = vrot.lane.b32.xlu1 %v1738_v54, %s1552_s11 }
 0x29f   : > { %747 = vrot.lane.b32.xlu0 %v1810_v0, %s1552_s11  ;;  %737 = vrot.lane.b32.xlu1 %v1780_v59, %s1552_s11 }
 0x2a3   : > { %791 = vrot.lane.b32.xlu0 %v1804_v63, %s1553_s14  ;;  %745 = vrot.lane.b32.xlu1 %v1786_v60, %s1552_s11  ;;  %s2290_s11 = scalar_lea.vmem [#allocation6], %s1283_s13 }
 0x2a7   : > { %799 = vrot.lane.b32.xlu0 %v1810_v0, %s1553_s14  ;;  %785 = vrot.lane.b32.xlu1 %v1734_v51, %s1553_s14 }
 0x2ab   : > { %843 = vrot.lane.b32.xlu0 %v1804_v63, %s1554_s15  ;;  %793 = vrot.lane.b32.xlu1 %v1738_v54, %s1553_s14 }
 0x2ad   : > { %v464_v1 = vpop.permute.xlu1 %463 }
 0x2af   : > { %851 = vrot.lane.b32.xlu0 %v1810_v0, %s1554_s15  ;;  %837 = vrot.lane.b32.xlu1 %v1734_v51, %s1554_s15 }
 0x2b1   : > { %v474_v4 = vpop.permute.xlu0 %473  ;;  %v472_v5 = vpop.permute.xlu1 %471 }
 0x2b2   : > { %v482_v38 = vsel %vm481_vm4, %v464_v1, %v472_v5  ;;  %v486_v39 = vsel %vm481_vm4, %v472_v5, %v464_v1 }
 0x2b3   : > { %968 = vperm.xlu0 %1444, %v289_v2   ;;  %845 = vrot.lane.b32.xlu1 %v1738_v54, %s1554_s15  ;;  %v501_v44 = vmul.f32 %v494_v36, %v486_v39  ;;  %v502_v46 = vmul.f32 %v498_v37, %v482_v38 }
 0x2b5   : > { %v1878_v9 = vpop.permute.xlu0 %519  ;;  %v518_v10 = vpop.permute.xlu1 %517 }
 0x2b7   : > { %978 = vperm.xlu0 %1444, %v291_v7   ;;  %789 = vrot.lane.b32.xlu1 %v1780_v59, %s1553_s14 }
 0x2b9   : > { %v1883_v11 = vpop.permute.xlu0 %527  ;;  %v526_v12 = vpop.permute.xlu1 %525 }
 0x2ba   : > { %v1890_v14 = vsel %vm533_vm1, %v518_v10, %v526_v12  ;;  %v1894_v15 = vsel %vm533_vm1, %v526_v12, %v518_v10  ;;  %v535_v25 = vsel %vm533_vm1, %v1878_v9, %v1883_v11  ;;  %v539_v38 = vsel %vm533_vm1, %v1883_v11, %v1878_v9  ;;  %v294_v9 = vld [vmem:[%s2357_s5 + $0x4] sm:$0x3] }
 0x2bb   : > { %797 = vrot.lane.b32.xlu1 %v1786_v60, %s1553_s14  ;;  %s1202_s14 = sshll.u32 %s2290_s11, 4  ;;  %s2300_s14 = int_to_ptr.vmem [resolvable:$true] %s1202_s14 }
 0x2bc   : > { %s1476_s16 = scalar_lea.vmem %s2300_s14, 1024 }
 0x2bd   : > { %v1898_v16 = vpop.permute.xlu0 %571  ;;  %v570_v17 = vpop.permute.xlu1 %569  ;;  %p1477_p6 = scmp.ne.s32.totalorder %s2300_s14, %s1476_s16 }
 0x2bf   : > { %841 = vrot.lane.b32.xlu1 %v1780_v59, %s1554_s15  ;;  %p1478_p12 = pnand %p1477_p6, %p2367_p11 }
 0x2c1   : > { %v1903_v18 = vpop.permute.xlu0 %579  ;;  %v578_v19 = vpop.permute.xlu1 %577  ;;  %p1479_p13 = pneg %p1478_p12 }
 0x2c2   : > { %v1907_v20 = vsel %vm585_vm2, %v570_v17, %v578_v19  ;;  %v1911_v21 = vsel %vm585_vm2, %v578_v19, %v570_v17  ;;  %v293_v17 = vld [vmem:[%s2357_s5 + $0x2] sm:$0x3] }
 0x2c3   : > { %849 = vrot.lane.b32.xlu1 %v1786_v60, %s1554_s15  ;;  %v546_v33 = vrot.slane %v293_v17, %v1934_v31  ;;  %s1298_s15 = sshll.u32 %s1613_s25, 10  ;;  %s1555_s25 = smov [#allocation6]  }
 0x2c4   : > { %s2305_s29 = scalar_lea.hbm %s2358_s6, %s1298_s15  ;;  %s1480_s18 = sshll.u32 %s1555_s25, 4  ;;  %s1481_s18 = int_to_ptr.vmem [resolvable:$false] %s1480_s18 }
 0x2c5   : > { %v1918_v23 = vpop.permute.xlu0 %623  ;;  %v622_v24 = vpop.permute.xlu1 %621  ;;  %s1482_s19 = scalar_lea.vmem %s1481_s18, 2048  ;;  %p1483_p7 = scmp.lt.s32.totalorder %s2300_s14, %s1481_s18 }
 0x2c6   : > { %p1484_p10 = scmp.lt.s32.totalorder %s1482_s19, %s1476_s16 }
 0x2c7   : > { %963 = vperm.xlu1 %1445, %v288_v22  }
 0x2c8   : > { %p1485_p2 = por %p1484_p10, %p1483_p7 }
 0x2c9   : > { %v1924_v27 = vpop.permute.xlu0 %631  ;;  %v630_v28 = vpop.permute.xlu1 %629 }
 0x2ca   : > { %v1928_v29 = vsel %vm637_vm3, %v622_v24, %v630_v28  ;;  %v1932_v30 = vsel %vm637_vm3, %v630_v28, %v622_v24  ;;  %v550_v24 = vrot.slane %v293_v17, %v1936_v32  ;;  %p1486_p4 = pnand %p1485_p2, %p1479_p13 }
 0x2cb   : > { %973 = vperm.xlu1 %1445, %v290_v26  }
 0x2cd   : > { %v1942_v34 = vpop.permute.xlu0 %683  ;;  %v1944_v35 = vpop.permute.xlu1 %681 }
 0x2d1   : > { %v1952_v40 = vpop.permute.xlu0 %691  ;;  %v466_v41 = vpop.permute.xlu1 %465 }
 0x2d2   : > { %v483_v42 = vsel %vm481_vm4, %v466_v41, %v474_v4  ;;  %v487_v43 = vsel %vm481_vm4, %v474_v4, %v466_v41 }
 0x2d3   : > { %v503_v45 = vmul.f32 %v494_v36, %v487_v43  ;;  %v504_v47 = vmul.f32 %v498_v37, %v483_v42  ;;  %v556_v42 = vmul.f32 %v550_v24, %v535_v25  ;;  %v554_v43 = vmul.f32 %v550_v24, %v1890_v14 }
 0x2d4   : > { %v555_v25 = vmul.f32 %v546_v33, %v539_v38 }
 0x2d5   : > { %v1958_v48 = vpop.permute.xlu0 %735  ;;  %v468_v49 = vpop.permute.xlu1 %467  ;;  %v1299_v50 = vpack.c.bf16 %v504_v47, %v502_v46  ;;  %v1301_v52 = vpack.c.bf16 %v503_v45, %v501_v44 }
 0x2d7   : > { %1300 = vmatprep.subr.bf16.mxu1 %v1299_v50 }
 0x2d8   : > { %1302 = vmatpush1.bf16.msra.mxu1 %v1301_v52 }
 0x2d9   : > { %v1960_v53 = vpop.permute.xlu0 %743  ;;  %v476_v57 = vpop.permute.xlu1 %475 }
 0x2da   : > { %v484_v26 = vsel %vm481_vm4, %v468_v49, %v476_v57  ;;  %v488_v28 = vsel %vm481_vm4, %v476_v57, %v468_v49 }
 0x2db   : > { %v505_v46 = vmul.f32 %v494_v36, %v488_v28  ;;  %v506_v47 = vmul.f32 %v498_v37, %v484_v26 }
 0x2dd   : > { %v1962_v58 = vpop.permute.xlu0 %787  ;;  %v522_v61 = vpop.permute.xlu1 %521 }
 0x2e1   : > { %v1964_v62 = vpop.permute.xlu0 %795  ;;  %v530_v1 = vpop.permute.xlu1 %529 }
 0x2e5   : > { %v1966_v2 = vpop.permute.xlu0 %839  ;;  %v1968_v4 = vpop.permute.xlu1 %573 }
 0x2e9   : > { %v524_v5 = vpop.permute.xlu0 %523  ;;  %v1970_v6 = vpop.permute.xlu1 %581 }
 0x2ed   : > { %v532_v7 = vpop.permute.xlu0 %531  ;;  %v1972_v10 = vpop.permute.xlu1 %625 }
 0x2ee   : > { %v537_v11 = vsel %vm533_vm1, %v524_v5, %v532_v7  ;;  %v541_v26 = vsel %vm533_vm1, %v532_v7, %v524_v5  ;;  %v598_v5 = vrot.slane %v294_v9, %v1934_v31 }
 0x2ef   : > { %v560_v28 = vmul.f32 %v550_v24, %v537_v11  ;;  %v559_v7 = vmul.f32 %v546_v33, %v541_v26 }
 0x2f1   : > { %v576_v12 = vpop.permute.xlu0 %575  ;;  %v1974_v13 = vpop.permute.xlu1 %633 }
 0x2f5   : > { %v584_v19 = vpop.permute.xlu0 %583  ;;  %v470_v22 = vpop.permute.xlu1 %469 }
 0x2f9   : > { %v1993_v39 = vpop.permute.xlu0 %627  ;;  %v478_v41 = vpop.permute.xlu1 %477 }
 0x2fa   : > { %v485_v44 = vsel %vm481_vm4, %v470_v22, %v478_v41  ;;  %v489_v45 = vsel %vm481_vm4, %v478_v41, %v470_v22  ;;  %v553_v22 = vmul.f32 %v546_v33, %v1894_v15  ;;  %v1307_v41 = vpack.c.bf16 %v556_v42, %v554_v43 }
 0x2fb   : > { %v507_v49 = vmul.f32 %v494_v36, %v489_v45  ;;  %v508_v50 = vmul.f32 %v498_v37, %v485_v44  ;;  %v536_v36 = vsel %vm533_vm1, %v522_v61, %v530_v1  ;;  %v602_v37 = vrot.slane %v294_v9, %v1936_v32 }
 0x2fc   : > { %v587_v44 = vsel %vm585_vm2, %v1898_v16, %v1903_v18  ;;  %v540_v15 = vsel %vm533_vm1, %v530_v1, %v522_v61  ;;  %v558_v38 = vmul.f32 %v550_v24, %v536_v36  ;;  %v591_v42 = vsel %vm585_vm2, %v1903_v18, %v1898_v16  ;;  %v295_v61 = vld [vmem:[%s2357_s5 + $0x6] sm:$0x3] }
 0x2fd   : > { %v2005_v52 = vpop.permute.xlu0 %635  ;;  %v2007_v14 = vpop.permute.xlu1 %689  ;;  %v1303_v57 = vpack.c.bf16 %v508_v50, %v506_v47  ;;  %v1305_v17 = vpack.c.bf16 %v507_v49, %v505_v46  ;;  %v1309_v47 = vpack.c.bf16 %v555_v25, %v553_v22  ;;  %v608_v43 = vmul.f32 %v602_v37, %v587_v44 }
 0x2fe   : > { %v606_v49 = vmul.f32 %v602_v37, %v1907_v20  ;;  %v1311_v50 = vpack.c.bf16 %v560_v28, %v558_v38  ;;  %v557_v1 = vmul.f32 %v546_v33, %v540_v15  ;;  %v589_v24 = vsel %vm585_vm2, %v576_v12, %v584_v19 }
 0x2ff   : > { %1304 = vmatprep.subr.bf16.mxu1 %v1303_v57  ;;  %v607_v11 = vmul.f32 %v598_v5, %v591_v42  ;;  %v605_v57 = vmul.f32 %v598_v5, %v1911_v21  ;;  %v588_v16 = vsel %vm585_vm2, %v1968_v4, %v1970_v6  ;;  %v654_v20 = vrot.slane %v295_v61, %v1936_v32 }
 0x300   : > { %1306 = vmatpush1.bf16.msra.mxu1 %v1305_v17  ;;  %v1313_v18 = vpack.c.bf16 %v559_v7, %v557_v1  ;;  %v593_v33 = vsel %vm585_vm2, %v584_v19, %v576_v12  ;;  %v612_v17 = vmul.f32 %v602_v37, %v589_v24  ;;  %v1315_v22 = vpack.c.bf16 %v608_v43, %v606_v49 }
 0x301   : > { %v2021_v45 = vpop.permute.xlu0 %847  ;;  %1308 = vmatprep.subr.bf16.mxu1 %v1307_v41  ;;  %v2023_v46 = vpop.permute.xlu1 %685  ;;  %v639_v21 = vsel %vm637_vm3, %v1918_v23, %v1924_v27  ;;  %v592_v36 = vsel %vm585_vm2, %v1970_v6, %v1968_v4  ;;  %v610_v26 = vmul.f32 %v602_v37, %v588_v16  ;;  %v650_v12 = vrot.slane %v295_v61, %v1934_v31 }
 0x302   : > { %v611_v19 = vmul.f32 %v598_v5, %v593_v33  ;;  %v1317_v41 = vpack.c.bf16 %v607_v11, %v605_v57  ;;  %v643_v44 = vsel %vm637_vm3, %v1924_v27, %v1918_v23  ;;  %v660_v15 = vmul.f32 %v654_v20, %v639_v21 }
 0x303   : > { %v658_v38 = vmul.f32 %v654_v20, %v1928_v29  ;;  %v1319_v7 = vpack.c.bf16 %v612_v17, %v610_v26  ;;  %v641_v4 = vsel %vm637_vm3, %v1993_v39, %v2005_v52  ;;  %v659_v42 = vmul.f32 %v650_v12, %v643_v44 }
 0x304   : > { %1310 = vmatpush1.bf16.msra.mxu1 %v1309_v47  ;;  %v609_v47 = vmul.f32 %v598_v5, %v592_v36  ;;  %v657_v43 = vmul.f32 %v650_v12, %v1932_v30  ;;  %v640_v23 = vsel %vm637_vm3, %v1972_v10, %v1974_v13  ;;  %v645_v29 = vsel %vm637_vm3, %v2005_v52, %v1993_v39  ;;  %v296_v52 = vld [vmem:[%s2357_s5 + $0xa] sm:$0x3] }
 0x305   : > { %1312 = vmatprep.subr.bf16.mxu1 %v1311_v50  ;;  %v2036_v9 = vpop.permute.xlu1 %693  ;;  %v2046_v25 = vpop.permute.xlu0 %687  ;;  %v664_v5 = vmul.f32 %v654_v20, %v641_v4  ;;  %v1323_v49 = vpack.c.bf16 %v660_v15, %v658_v38  ;;  %v644_v50 = vsel %vm637_vm3, %v1974_v13, %v1972_v10  ;;  %v662_v30 = vmul.f32 %v654_v20, %v640_v23 }
 0x306   : > { %v1321_v27 = vpack.c.bf16 %v611_v19, %v609_v47  ;;  %v663_v1 = vmul.f32 %v650_v12, %v645_v29  ;;  %v1325_v24 = vpack.c.bf16 %v659_v42, %v657_v43  ;;  %v661_v16 = vmul.f32 %v650_v12, %v644_v50 }
 0x307   : > { %v1327_v57 = vpack.c.bf16 %v664_v5, %v662_v30  ;;  %v1331_v10 = vpack.c.bf16 %v1740_v55, %v1738_v54  ;;  %v702_v13 = vsel %vm697_vm5, %v2007_v14, %v1944_v35  ;;  %v714_v20 = vrot.slane %v296_v52, %v1936_v32 }
 0x308   : > { %1314 = vmatpush1.bf16.msra.mxu1 %v1313_v18  ;;  %v1329_v18 = vpack.c.bf16 %v663_v1, %v661_v16  ;;  %v698_v54 = vsel %vm697_vm5, %v1944_v35, %v2007_v14  ;;  %v1333_v55 = vpack.c.bf16 %v1746_v56, %v1734_v51  ;;  %v710_v21 = vrot.slane %v296_v52, %v1934_v31  ;;  %v297_v51 = vld [vmem:[%s2357_s5 + $0xc] sm:$0x3] }
 0x309   : > { %1316 = vmatprep.subr.bf16.mxu1 %v1315_v22  ;;  %v2056_v28 = vpop.permute.xlu1 %733  ;;  %v696_v6 = vpop.permute.xlu0 %695  ;;  %v703_v22 = vsel %vm697_vm5, %v1952_v40, %v1942_v34  ;;  %v718_v36 = vmul.f32 %v714_v20, %v702_v13  ;;  %v1335_v26 = vpack.c.bf16 %v1810_v0, %v1786_v60  ;;  %v699_v12 = vsel %vm697_vm5, %v1942_v34, %v1952_v40  ;;  %v299_v60 = vld [vmem:[%s2357_s5 + $0x10] sm:$0x3] }
 0x30a   : > { %v705_v19 = vsel %vm697_vm5, %v696_v6, %v2046_v25  ;;  %v720_v35 = vmul.f32 %v714_v20, %v703_v22  ;;  %v717_v56 = vmul.f32 %v710_v21, %v698_v54  ;;  %v1337_v34 = vpack.c.bf16 %v1804_v63, %v1780_v59 }
 0x30b   : > { %v704_v40 = vsel %vm697_vm5, %v2036_v9, %v2023_v46  ;;  %v701_v14 = vsel %vm697_vm5, %v2046_v25, %v696_v6  ;;  %v724_v44 = vmul.f32 %v714_v20, %v705_v19  ;;  %v766_v38 = vrot.slane %v297_v51, %v1936_v32 }
 0x30c   : > { %1318 = vmatpush1.bf16.msra.mxu1 %v1317_v41  ;;  %v719_v41 = vmul.f32 %v710_v21, %v699_v12  ;;  %v1339_v15 = vpack.c.bf16 %v720_v35, %v718_v36  ;;  %v2154_v47 = vrot.slane %v299_v60, %v1936_v32  ;;  %v700_v25 = vsel %vm697_vm5, %v2023_v46, %v2036_v9 }
 0x30d   : > { %1320 = vmatprep.subr.bf16.mxu1 %v1319_v7  ;;  %v2068_v37 = vpop.permute.xlu1 %741  ;;  %v2085_v11 = vpop.permute.xlu0 %739  ;;  %v2151_v7 = vrot.slane %v299_v60, %v1934_v31  ;;  %v755_v4 = vsel %vm749_vm6, %v1960_v53, %v1958_v48  ;;  %v722_v6 = vmul.f32 %v714_v20, %v704_v40  ;;  %v723_v42 = vmul.f32 %v710_v21, %v701_v14 }
 0x30e   : > { %v754_v59 = vsel %vm749_vm6, %v2068_v37, %v2056_v28  ;;  %v1341_v23 = vpack.c.bf16 %v719_v41, %v717_v56  ;;  %v859_v46 = vsel %vm853_vm7, %v2021_v45, %v1966_v2  ;;  %v750_v9 = vsel %vm749_vm6, %v2056_v28, %v2068_v37 }
 0x30f   : > { %v770_v29 = vmul.f32 %v766_v38, %v754_v59  ;;  %v762_v5 = vrot.slane %v297_v51, %v1934_v31  ;;  %v1343_v50 = vpack.c.bf16 %v724_v44, %v722_v6  ;;  %v751_v30 = vsel %vm749_vm6, %v1958_v48, %v1960_v53 }
 0x310   : > { %1322 = vmatpush1.bf16.msra.mxu1 %v1321_v27  ;;  %v855_v27 = vsel %vm853_vm7, %v1966_v2, %v2021_v45  ;;  %v772_v1 = vmul.f32 %v766_v38, %v755_v4  ;;  %v298_v45 = vld [vmem:[%s2357_s5 + $0xe] sm:$0x3]  ;;  %v876_v37 = vmul.f32 %v2154_v47, %v859_v46  ;;  %v803_v14 = vsel %vm801_vm8, %v1962_v58, %v1964_v62 }
 0x311   : > { %1324 = vmatprep.subr.bf16.mxu1 %v1323_v49  ;;  %v2083_v61 = vpop.permute.xlu1 %737  ;;  %v2100_v33 = vpop.permute.xlu0 %747  ;;  %v721_v49 = vmul.f32 %v710_v21, %v700_v25  ;;  %v875_v28 = vmul.f32 %v2151_v7, %v855_v27  ;;  %v818_v21 = vrot.slane %v298_v45, %v1936_v32  ;;  %v807_v32 = vsel %vm801_vm8, %v1964_v62, %v1962_v58 }
 0x312   : > { %v757_v16 = vsel %vm749_vm6, %v2100_v33, %v2085_v11 }
 0x313   : > { %v1345_v53 = vpack.c.bf16 %v723_v42, %v721_v49  ;;  %v824_v41 = vmul.f32 %v818_v21, %v807_v32 }
 0x314   : > { %1326 = vmatpush1.bf16.msra.mxu1 %v1325_v24  ;;  %v769_v24 = vmul.f32 %v762_v5, %v750_v9 }
 0x315   : > { %1328 = vmatprep.subr.bf16.mxu1 %v1327_v57  ;;  %v2087_v39 = vpop.permute.xlu1 %745  ;;  %v2147_v63 = vpop.permute.xlu0 %791 }
 0x316   : > { %v756_v2 = vsel %vm749_vm6, %v2087_v39, %v2083_v61  ;;  %v752_v13 = vsel %vm749_vm6, %v2083_v61, %v2087_v39  ;;  %v776_v61 = vmul.f32 %v766_v38, %v757_v16  ;;  %v286_v16 = vld [vmem:[%s2355_s3 + $0x50] sm:$0xff] }
 0x317   : > { %v774_v20 = vmul.f32 %v766_v38, %v756_v2  ;;  %v773_v35 = vmul.f32 %v762_v5, %v752_v13 }
 0x318   : > { %1330 = vmatpush1.bf16.msra.mxu1 %v1329_v18 }
 0x319   : > { %1332 = vmatprep.subr.bf16.mxu1 %v1331_v10  ;;  %v2102_v17 = vpop.permute.xlu1 %785  ;;  %v800_v57 = vpop.permute.xlu0 %799  ;;  %v1347_v10 = vpack.c.bf16 %v772_v1, %v770_v29 }
 0x31a   : > { %v805_v58 = vsel %vm801_vm8, %v2147_v63, %v800_v57 }
 0x31c   : > { %1334 = vmatpush1.bf16.msra.mxu1 %v1333_v55  ;;  %v771_v55 = vmul.f32 %v762_v5, %v751_v30 }
 0x31d   : > { %1336 = vmatprep.subr.bf16.mxu1 %v1335_v26  ;;  %v2130_v0 = vpop.permute.xlu1 %793  ;;  %v753_v26 = vsel %vm749_vm6, %v2085_v11, %v2100_v33  ;;  %v844_v56 = vpop.permute.xlu0 %843  ;;  %v1351_v11 = vpack.c.bf16 %v776_v61, %v774_v20  ;;  %v814_v33 = vrot.slane %v298_v45, %v1934_v31 }
 0x31e   : > { %v806_v36 = vsel %vm801_vm8, %v2130_v0, %v2102_v17  ;;  %v1349_v51 = vpack.c.bf16 %v771_v55, %v769_v24  ;;  %v802_v60 = vsel %vm801_vm8, %v2102_v17, %v2130_v0  ;;  %v775_v40 = vmul.f32 %v762_v5, %v753_v26 }
 0x31f   : > { %v809_v17 = vsel %vm801_vm8, %v800_v57, %v2147_v63  ;;  %v821_v0 = vmul.f32 %v814_v33, %v802_v60  ;;  %v823_v4 = vmul.f32 %v814_v33, %v803_v14  ;;  %v827_v46 = vmul.f32 %v814_v33, %v805_v58  ;;  %v283_v57 = vld [vmem:[%s2355_s3 + $0x38] sm:$0xff] }
 0x320   : > { %1338 = vmatpush1.bf16.msra.mxu1 %v1337_v34  ;;  %v822_v34 = vmul.f32 %v818_v21, %v806_v36  ;;  %v1353_v31 = vpack.c.bf16 %v775_v40, %v773_v35  ;;  %v828_v62 = vmul.f32 %v818_v21, %v809_v17 }
 0x321   : > { %1340 = vmatprep.subr.bf16.mxu1 %v1339_v15  ;;  %v838_v43 = vpop.permute.xlu1 %837  ;;  %v852_v6 = vpop.permute.xlu0 %851 }
 0x322   : > { %v1355_v25 = vpack.c.bf16 %v824_v41, %v822_v34  ;;  %v857_v9 = vsel %vm853_vm7, %v844_v56, %v852_v6  ;;  %v861_v29 = vsel %vm853_vm7, %v852_v6, %v844_v56 }
 0x323   : > { %v879_v30 = vmul.f32 %v2151_v7, %v857_v9  ;;  %v880_v1 = vmul.f32 %v2154_v47, %v861_v29 }
 0x324   : > { %1342 = vmatpush1.bf16.msra.mxu1 %v1341_v23  ;;  %v1357_v23 = vpack.c.bf16 %v823_v4, %v821_v0 }
 0x325   : > { %1344 = vmatprep.subr.bf16.mxu1 %v1343_v50  ;;  %v846_v48 = vpop.permute.xlu1 %845 }
 0x326   : > { %v854_v52 = vsel %vm853_vm7, %v838_v43, %v846_v48  ;;  %v858_v18 = vsel %vm853_vm7, %v846_v48, %v838_v43  ;;  %v282_v48 = vld [vmem:[%s2355_s3 + $0x30] sm:$0xff] }
 0x327   : > { %v873_v22 = vmul.f32 %v2151_v7, %v854_v52  ;;  %v874_v54 = vmul.f32 %v2154_v47, %v858_v18  ;;  %v285_v52 = vld [vmem:[%s2355_s3 + $0x48] sm:$0xff]  ;;  %v284_v18 = vld [vmem:[%s2355_s3 + $0x40] sm:$0xff] }
 0x328   : > { %1346 = vmatpush1.bf16.msra.mxu1 %v1345_v53  ;;  %v281_v53 = vld [vmem:[%s2355_s3 + $0x28] sm:$0xff] }
 0x329   : > { %v1365_v39 = vpack.c.bf16 %v875_v28, %v873_v22  ;;  %1348 = vmatprep.subr.bf16.mxu1 %v1347_v10  ;;  %v790_v12 = vpop.permute.xlu1 %789  ;;  %v1363_v19 = vpack.c.bf16 %v876_v37, %v874_v54  ;;  %v276_v28 = vld [vmem:[%s2355_s3] sm:$0xff]  ;;  %v287_v10 = vld [vmem:[%s2355_s3 + $0x58] sm:$0xff] }
 0x32b   : > { %1364 = vmatprep.subr.bf16.mxu0 %v1363_v19 }
 0x32c   : > { %1350 = vmatpush1.bf16.msra.mxu1 %v1349_v51  ;;  %1366 = vmatpush1.bf16.msra.mxu0 %v1365_v39 }
 0x32d   : > { %1352 = vmatprep.subr.bf16.mxu1 %v1351_v11  ;;  %v798_v44 = vpop.permute.xlu1 %797 }
 0x32e   : > { %v808_v59 = vsel %vm801_vm8, %v798_v44, %v790_v12  ;;  %v804_v15 = vsel %vm801_vm8, %v790_v12, %v798_v44 }
 0x32f   : > { %v826_v38 = vmul.f32 %v818_v21, %v808_v59  ;;  %v825_v43 = vmul.f32 %v814_v33, %v804_v15 }
 0x330   : > { %1354 = vmatpush1.bf16.msra.mxu1 %v1353_v31 }
 0x331   : > { %1356 = vmatprep.subr.bf16.mxu1 %v1355_v25  ;;  %v842_v42 = vpop.permute.xlu1 %841  ;;  %v1359_v27 = vpack.c.bf16 %v828_v62, %v826_v38  ;;  %v1361_v50 = vpack.c.bf16 %v827_v46, %v825_v43 }
 0x332   : > { %v969_v12 = vpop.permute.xlu0 %968 }
 0x334   : > { %1358 = vmatpush1.bf16.msra.mxu1 %v1357_v23 }
 0x335   : > { %1360 = vmatprep.subr.bf16.mxu1 %v1359_v27  ;;  %v850_v5 = vpop.permute.xlu1 %849 }
 0x336   : > { %v856_v63 = vsel %vm853_vm7, %v842_v42, %v850_v5  ;;  %v860_v49 = vsel %vm853_vm7, %v850_v5, %v842_v42  ;;  %v979_v4 = vpop.permute.xlu0 %978 }
 0x337   : > { %v877_v2 = vmul.f32 %v2151_v7, %v856_v63  ;;  %v878_v45 = vmul.f32 %v2154_v47, %v860_v49  ;;  %v279_v7 = vld [vmem:[%s2355_s3 + $0x18] sm:$0xff]  ;;  %v278_v47 = vld [vmem:[%s2355_s3 + $0x10] sm:$0xff] }
 0x338   : > { %1362 = vmatpush1.bf16.msra.mxu1 %v1361_v50 }
 0x339   : > { %v1369_v37 = vpack.c.bf16 %v879_v30, %v877_v2  ;;  %v1367_v24 = vpack.c.bf16 %v880_v1, %v878_v45 }
 0x33b   : > { %1059 = vmatmul.mubr.f32.vlgmr.msra.gmra.mrb[0].mxu1 %v276_v28  ;;  %1368 = vmatprep.subr.bf16.mxu0 %v1367_v24 }
 0x33c   : > { %1370 = vmatpush1.bf16.msra.mxu0 %v1369_v37  ;;  %1064 = vmatprep.mubr.f32.mxu1 %v280_v8 }
 0x33f   : > { %1065 = vmatmul.mubr.f32.gmra.mrb[2].mxu1 %v279_v7  ;;  %1288 = vmatmul.mubr.msk.f32.vlgmr.msra.gmra.mrb[8].mxu0 %vm981_vm9, %v278_v47 }
 0x340   : > { %1070 = vmatprep.mubr.f32.mxu1 %v283_v57  ;;  %1153 = vmatprep.mubr.f32.mxu0 %v1545_v3 }
 0x343   : > { %1071 = vmatmul.mubr.f32.gmra.mrb[4].mxu1 %v282_v48  ;;  %1289 = vmatmul.mubr.msk.f32.gmra.mrb[10].mxu0 %vm981_vm9, %v281_v53 }
 0x344   : > { %1076 = vmatprep.mubr.f32.mxu1 %v286_v16  ;;  %1159 = vmatprep.mubr.f32.mxu0 %v1545_v3 }
 0x346   : > { %v964_v22 = vpop.permute.xlu1 %963 }
 0x347   : > { %1077 = vmatmul.mubr.f32.gmra.mrb[6].mxu1 %v285_v52  ;;  %1290 = vmatmul.mubr.msk.f32.gmra.mrb[12].mxu0 %vm981_vm9, %v284_v18 }
 0x348   : > { %1165 = vmatprep.mubr.f32.mxu0 %v1545_v3 }
 0x34a   : > { %v974_v40 = vpop.permute.xlu1 %973 }
 0x34b   : > { %1291 = vmatmul.mubr.msk.f32.gmra.mrb[14].mxu0 %vm981_vm9, %v287_v10 }
 0x40e   : > { %v1060_v13 = vpop.f32.mrb[0].mxu1 }
 0x40f   : > { %v1062_v20 = vpop.f32.mrb[1].mxu1  ;;  %v1061_v54 = vadd.f32 %v1060_v13, %v964_v22 }
 0x410   : > { %v1063_v55 = vadd.f32 %v1062_v20, %v964_v22 }
 0x412   : > { %v1066_v21 = vpop.f32.mrb[2].mxu1  ;;  %v1149_v36 = vpop.f32.mrb[8].mxu0 }
 0x413   : > { %v1150_v26 = vadd.f32 %v1149_v36, %v1061_v54  ;;  %v1068_v61 = vpop.f32.mrb[3].mxu1  ;;  %v1151_v39 = vpop.f32.mrb[9].mxu0  ;;  %v1067_v3 = vadd.f32 %v1066_v21, %v969_v12 }
 0x414   : > { %v1152_v19 = vadd.f32 %v1151_v39, %v1063_v55  ;;  %v1069_v35 = vadd.f32 %v1068_v61, %v969_v12 }
 0x415   : > { %v1172_v32 = vmax.f32 %v1150_v26, 0.0 }
 0x416   : > { %v1173_v51 = vmax.f32 %v1152_v19, 0.0  ;;  %v1072_v56 = vpop.f32.mrb[4].mxu1  ;;  %v1155_v60 = vpop.f32.mrb[10].mxu0 }
 0x417   : > { %1180 = vst [vmem:[%s2290_s11] sm:$0xff] %v1172_v32  ;;  %v1156_v34 = vadd.f32 %v1155_v60, %v1067_v3  ;;  %v1074_v11 = vpop.f32.mrb[5].mxu1  ;;  %v1157_v33 = vpop.f32.mrb[11].mxu0  ;;  %v1073_v41 = vadd.f32 %v1072_v56, %v974_v40 }
 0x418   : > { %1181 = vst [vmem:[%s2290_s11 + $0x8] sm:$0xff] %v1173_v51  ;;  %v1158_v14 = vadd.f32 %v1157_v33, %v1069_v35  ;;  %v1075_v17 = vadd.f32 %v1074_v11, %v974_v40 }
 0x419   : > { %v1174_v44 = vmax.f32 %v1156_v34, 0.0 }
 0x41a   : > { %v1175_v0 = vmax.f32 %v1158_v14, 0.0  ;;  %v1078_v59 = vpop.f32.mrb[6].mxu1  ;;  %v1161_v31 = vpop.f32.mrb[12].mxu0 }
 0x41b   : > { %1182 = vst [vmem:[%s2290_s11 + $0x10] sm:$0xff] %v1174_v44  ;;  %v1162_v15 = vadd.f32 %v1161_v31, %v1073_v41  ;;  %v1080_v38 = vpop.f32.mrb[7].mxu1  ;;  %v1163_v25 = vpop.f32.mrb[13].mxu0  ;;  %v1079_v62 = vadd.f32 %v1078_v59, %v979_v4 }
 0x41c   : > { %1183 = vst [vmem:[%s2290_s11 + $0x18] sm:$0xff] %v1175_v0  ;;  %v1164_v58 = vadd.f32 %v1163_v25, %v1075_v17  ;;  %v1081_v42 = vadd.f32 %v1080_v38, %v979_v4 }
 0x41d   : > { %v1176_v6 = vmax.f32 %v1162_v15, 0.0 }
 0x41e   : > { %v1177_v43 = vmax.f32 %v1164_v58, 0.0  ;;  %v1167_v23 = vpop.f32.mrb[14].mxu0 }
 0x41f   : > { %1184 = vst [vmem:[%s2290_s11 + $0x20] sm:$0xff] %v1176_v6  ;;  %v1168_v27 = vadd.f32 %v1167_v23, %v1079_v62  ;;  %v1169_v46 = vpop.f32.mrb[15].mxu0 }
 0x420   : > { %1185 = vst [vmem:[%s2290_s11 + $0x28] sm:$0xff] %v1177_v43  ;;  %v1170_v9 = vadd.f32 %v1169_v46, %v1081_v42 }
 0x421   : > { %v1178_v29 = vmax.f32 %v1168_v27, 0.0 }
 0x422   : > { %v1179_v5 = vmax.f32 %v1170_v9, 0.0 }
 0x423   : > { %1186 = vst [vmem:[%s2290_s11 + $0x30] sm:$0xff] %v1178_v29 }
 0x424   : > { %1187 = vst [vmem:[%s2290_s11 + $0x38] sm:$0xff] %v1179_v5 }
 0x425   : > { %1489 = shalt.err (!%p1486_p4)
}
 0x426   : > { %s1490_s8 = scalar_lea.hbm %s2305_s29, 1024  ;;  %s1494_s11 = scalar_lea.hbm %s2358_s6, 2048 }
 0x427   : > { %p1491_p5 = scmp.ne.s32.totalorder %s2305_s29, %s1490_s8  ;;  %p1495_p0 = scmp.lt.u32.totalorder %s2305_s29, %s2358_s6 }
 0x428   : > { %p1496_p1 = scmp.lt.u32.totalorder %s1494_s11, %s1490_s8  ;;  %p1498_p6 = scmp.lt.u32.totalorder %s1490_s8, %s2305_s29 }
 0x429   : > { %p1492_p8 = pnand %p1491_p5, %p2367_p11 }
 0x42a   : > { %p1497_p3 = por %p1496_p1, %p1495_p0 }
 0x42b   : > { %p1493_p9 = pneg %p1492_p8 }
 0x42c   : > { %p1499_p12 = por %p1498_p6, %p1497_p3 }
 0x42e   : > { %p1500_p13 = pnand %p1499_p12, %p1493_p9 }
 0x430   : > { %1503 = shalt.err (!%p1500_p13)
}
 0x431   : > { %s1556_s28 = smov 256  }
 0x432   : > { %1389 = dma.vmem_to_hbm [thread:$0]  (%p2367_p11), %s2300_s14, 1024, %s2305_s29, %s1189_s7, %s1556_s28, %s1556_s28, %s1548_s20  }
 0x433 PF: > { %s1217_s16 = sand.u32 1, %s1530_s21   ;;  %p2368_p7 = scmp.ne.s32.totalorder %s2363_s10, 0 }
 0x434   : > { %p2369_p10 = scmp.ge.s32.totalorder %s1542_s24, 2  ;;  %s1218_s25 = scalar_lea.sflag [#allocation5], %s1217_s16 }
 0x436   : > { %p1396_p2 = pnand %p2369_p10, %p2368_p7 }
 0x438   : > { %1525 = dma.done.wait (!%p1396_p2), %s1218_s25, 1024  }
 0x439   : > { %1527 = vsyncadd (!%p1396_p2), %s1218_s25, 4294966272  ;;  %p19_p4 = scmp.ge.s32.totalorder %s1617_s27, 4   ;;  %s2370_s21 = smov %s1534_s22 }
 0x43a   : > { %s2371_s22 = smov %s1538_s23  ;;  %s2372_s23 = smov %s1629_s30 }
 0x43b   : > { %s2373_s24 = smov %s1617_s27  ;;  %21 = sbr.rel (!%p19_p4) target bundleno = 5 (0x5), region = 89 }
 0x442   :  { %1223 = vsyncpa [#allocation4], 1 }
 0x443   :  { %1225 = vsyncpa [#allocation4 + $0x1], 1 }
 0x444   :  { %1226 = vsyncpa [#allocation5], 1 }
 0x445   :  { %1228 = vsyncpa [#allocation5 + $0x1], 1 }

</bundles_post_ra>
